<compile_context>
chip_gen: v7x
topology: tpu7x:2x2x1
jax: 0.10.0
libtpu: 0.0.40
codegen_flags: <defaults>
</compile_context>

<pallas_src>
import functools

import jax
import jax.numpy as jnp
from jax.experimental import pallas as pl
from jax.experimental.pallas import tpu as pltpu

NEG_INF = -1e9
_VMEM_LIMIT = 32 * 1024 * 1024  # explicit budget: fits v7x (64 MiB) & v5e/v6e (128 MiB)


def _pick_tile(n):
    """Largest row/col tile that divides N: 256/128 if possible, else full extent."""
    for t in (256, 128):
        if n % t == 0:
            return t
    # TODO(synk): pad ragged N up to a multiple of 128 instead of a full-extent block.
    return n


# ---------------------------------------------------------------------------
# Kernel 1: per-layer projection.
#   xw = x @ [W | W @ A]  where A is the block-diagonal fold of (a_src, a_dst),
#   so the feature projection and ALL heads' attention scores come from one
#   MXU matmul.  Features stored bf16 (MXU input for aggregation), scores f32.
# ---------------------------------------------------------------------------
def _proj_kernel(x_ref, wext_ref, h_ref, s_ref, *, hf):
    xw = jnp.dot(x_ref[...].astype(jnp.bfloat16),
                 wext_ref[...].astype(jnp.bfloat16),
                 preferred_element_type=jnp.float32)          # [TM, HF + 2H] f32
    h_ref[...] = xw[:, :hf].astype(h_ref.dtype)               # bf16 features
    s_ref[...] = xw[:, hf:].astype(s_ref.dtype)               # f32 attention scores


# ---------------------------------------------------------------------------
# Kernel 2: masked multi-head attention, flash-style online softmax.
#   grid = (row_blocks, col_blocks); col axis is the reduction ("arbitrary").
# ---------------------------------------------------------------------------
def _attn_kernel(ssrc_ref, sdst_ref, adj_ref, hcol_ref, out_ref,
                 m_ref, l_ref, acc_ref, *, num_heads, out_dim, is_final):
    j = pl.program_id(1)

    @pl.when(j == 0)
    def _init():
        m_ref[...] = jnp.full(m_ref.shape, NEG_INF, m_ref.dtype)
        l_ref[...] = jnp.zeros(l_ref.shape, l_ref.dtype)
        acc_ref[...] = jnp.zeros(acc_ref.shape, acc_ref.dtype)

    # Hoisted out of the head loop: one adjacency compare per [TM, TN] tile.
    mask = adj_ref[...].astype(jnp.float32) > 0.0              # [TM, TN]
    s_src = ssrc_ref[...]                                      # [TM, H]  f32
    s_dst = sdst_ref[...]                                      # [H, TN]  f32
    h_col = hcol_ref[...]                                      # [TN, H*F] bf16

    for hd in range(num_heads):                                # static unroll (H small)
        e = s_src[:, hd:hd + 1] + s_dst[hd:hd + 1, :]          # [TM, TN]
        e = jnp.where(e > 0, e, 0.2 * e)                       # LeakyReLU(0.2)
        e = jnp.where(mask, e, NEG_INF)                        # mask non-edges

        m_prev = m_ref[:, hd:hd + 1]
        m_new = jnp.maximum(m_prev, jnp.max(e, axis=-1, keepdims=True))
        corr = jnp.exp(m_prev - m_new)
        p = jnp.exp(e - m_new)                                 # [TM, TN] f32

        l_ref[:, hd:hd + 1] = corr * l_ref[:, hd:hd + 1] + \
            jnp.sum(p, axis=-1, keepdims=True)
        m_ref[:, hd:hd + 1] = m_new

        sl = pl.ds(hd * out_dim, out_dim)
        pv = jnp.dot(p.astype(jnp.bfloat16), h_col[:, sl],
                     preferred_element_type=jnp.float32)       # [TM, F] (MXU bf16)
        acc_ref[:, sl] = corr * acc_ref[:, sl] + pv

    @pl.when(j == pl.num_programs(1) - 1)
    def _finalize():
        if is_final:
            total = jnp.zeros((out_ref.shape[0], out_dim), jnp.float32)
            for hd in range(num_heads):
                inv_l = pl.reciprocal(l_ref[:, hd:hd + 1], approx=True)
                total = total + acc_ref[:, hd * out_dim:(hd + 1) * out_dim] * inv_l
            out_ref[...] = (total * (1.0 / num_heads)).astype(out_ref.dtype)
        else:
            outs = []
            for hd in range(num_heads):
                inv_l = pl.reciprocal(l_ref[:, hd:hd + 1], approx=True)
                o = acc_ref[:, hd * out_dim:(hd + 1) * out_dim] * inv_l
                o = jnp.where(o > 0, o, jnp.exp(o) - 1.0)      # ELU
                outs.append(o)
            res = outs[0] if num_heads == 1 else jnp.concatenate(outs, axis=-1)
            out_ref[...] = res.astype(out_ref.dtype)           # single lane-dense store


def gat_layer(x, adj_i8, w_ext, *, num_heads, out_dim, is_final):
    n, d_in = x.shape
    hf = num_heads * out_dim
    dtot = hf + 2 * num_heads
    tm = _pick_tile(n)
    tn = _pick_tile(n)

    # ---- projection: one fused matmul per row tile --------------------------
    h_bf, scores = pl.pallas_call(
        functools.partial(_proj_kernel, hf=hf),
        out_shape=(jax.ShapeDtypeStruct((n, hf), jnp.bfloat16),
                   jax.ShapeDtypeStruct((n, 2 * num_heads), jnp.float32)),
        grid=(n // tm,),
        in_specs=[pl.BlockSpec((tm, d_in), lambda i: (i, 0)),
                  pl.BlockSpec((d_in, dtot), lambda i: (0, 0))],
        out_specs=(pl.BlockSpec((tm, hf), lambda i: (i, 0)),
                   pl.BlockSpec((tm, 2 * num_heads), lambda i: (i, 0))),
        compiler_params=pltpu.CompilerParams(
            dimension_semantics=("parallel",),
            vmem_limit_bytes=_VMEM_LIMIT),
    )(x, w_ext)

    s_src = scores[:, :num_heads]                 # [N, H]  (query-side scores)
    s_dst_t = scores[:, num_heads:].T             # [H, N]  (neighbor-side, lane-major)

    # ---- tiled attention with online softmax ---------------------------------
    out_feat = out_dim if is_final else hf
    out = pl.pallas_call(
        functools.partial(_attn_kernel, num_heads=num_heads,
                          out_dim=out_dim, is_final=is_final),
        out_shape=jax.ShapeDtypeStruct((n, out_feat), jnp.float32),
        grid=(n // tm, n // tn),
        in_specs=[
            pl.BlockSpec((tm, num_heads), lambda i, j: (i, 0)),   # s_src rows
            pl.BlockSpec((num_heads, tn), lambda i, j: (0, j)),   # s_dst cols
            pl.BlockSpec((tm, tn), lambda i, j: (i, j)),          # adjacency (int8)
            pl.BlockSpec((tn, hf), lambda i, j: (j, 0)),          # neighbor features
        ],
        out_specs=pl.BlockSpec((tm, out_feat), lambda i, j: (i, 0)),
        scratch_shapes=[pltpu.VMEM((tm, num_heads), jnp.float32),   # running max
                        pltpu.VMEM((tm, num_heads), jnp.float32),   # running denom
                        pltpu.VMEM((tm, hf), jnp.float32)],         # accumulator
        compiler_params=pltpu.CompilerParams(
            dimension_semantics=("parallel", "arbitrary"),
            vmem_limit_bytes=_VMEM_LIMIT),
    )(s_src, s_dst_t, adj_i8, h_bf)
    return out


class GATNetPallas:
    """JAX/Pallas port of GATNet(node_dim, num_layers, layer_dims, num_heads_list, dropout)."""

    def __init__(self, node_dim, num_layers, layer_dims, num_heads_list, dropout, key):
        assert num_layers == len(layer_dims) == len(num_heads_list), "Check on the dimensions!"
        del dropout  # TODO(synk): dropout ignored (forward in inference mode)
        dims = [node_dim] + list(layer_dims)
        heads = [1] + list(num_heads_list)
        self.layers = []
        self.raw_layers = []
        for i in range(len(dims) - 1):
            in_dim = dims[i] * heads[i]
            out_dim = dims[i + 1]
            h = heads[i + 1]
            is_final = (i == len(dims) - 2)
            key, k1, k2, k3 = jax.random.split(key, 4)
            scale = 1.0 / jnp.sqrt(jnp.float32(in_dim))
            w = jax.random.normal(k1, (in_dim, h * out_dim), jnp.float32) * scale
            a_src = jax.random.normal(k2, (h, out_dim), jnp.float32) * 0.1
            a_dst = jax.random.normal(k3, (h, out_dim), jnp.float32) * 0.1
            # Fold per-head attention vectors into a block-diagonal matrix so
            # the projection + all head scores come from ONE extended matmul.
            a_mat = jnp.zeros((h * out_dim, 2 * h), jnp.float32)
            for hd in range(h):
                a_mat = a_mat.at[hd * out_dim:(hd + 1) * out_dim, hd].set(a_src[hd])
                a_mat = a_mat.at[hd * out_dim:(hd + 1) * out_dim, h + hd].set(a_dst[hd])
            w_ext = jnp.concatenate([w, w @ a_mat], axis=1)     # [D_in, H*F + 2H]
            self.layers.append((w_ext, h, out_dim, is_final))
            self.raw_layers.append((w, a_src, a_dst, h, out_dim, is_final))

    def __call__(self, data):
        x, adj = data
        adj_i8 = (adj > 0).astype(jnp.int8)   # 4x smaller adjacency DMA per layer
        # TODO(synk): fuse the whole network into one pallas_call to keep adj
        # resident across layers and avoid the inter-layer HBM round trip.
        for (w_ext, h, out_dim, is_final) in self.layers:
            x = gat_layer(x, adj_i8, w_ext, num_heads=h, out_dim=out_dim,
                          is_final=is_final)
        return x  # matches `output, _ = self.gat_net(data); return output`


def gat_reference(x, adj, raw_layers):
    """Pure-JAX f32 reference of the same forward pass."""
    for (w, a_src, a_dst, num_heads, out_dim, is_final) in raw_layers:
        h = x @ w
        outs = []
        for hd in range(num_heads):
            hh = h[:, hd * out_dim:(hd + 1) * out_dim]
            e = hh @ a_src[hd][:, None] + (hh @ a_dst[hd][:, None]).T
            e = jnp.where(e > 0, e, 0.2 * e)
            e = jnp.where(adj > 0, e, NEG_INF)
            alpha = jax.nn.softmax(e, axis=-1)
            outs.append(alpha @ hh)
        if is_final:
            x = sum(outs) / num_heads
        else:
            x = jnp.concatenate(
                [jnp.where(o > 0, o, jnp.exp(o) - 1.0) for o in outs], axis=-1)
    return x


if __name__ == "__main__":
    key = jax.random.PRNGKey(0)
    k_x, k_adj, k_params = jax.random.split(key, 3)

    # Small graph: N=16 nodes, node_dim=8 features.
    N, NODE_DIM = 16, 8
    x = jax.random.normal(k_x, (N, NODE_DIM), jnp.float32)
    adj = (jax.random.uniform(k_adj, (N, N)) < 0.3).astype(jnp.float32)
    adj = jnp.maximum(adj, jnp.eye(N, dtype=jnp.float32))  # self-loops

    # GATNet(node_dim=8, num_layers=2, layer_dims=[16, 8], num_heads_list=[2, 1], dropout=0)
    net = GATNetPallas(node_dim=NODE_DIM, num_layers=2, layer_dims=[16, 8],
                       num_heads_list=[2, 1], dropout=0, key=k_params)

    out = jax.block_until_ready(net((x, adj)))
    assert out.shape == (N, 8), out.shape
    assert bool(jnp.all(jnp.isfinite(out)))

    ref = gat_reference(x, adj, net.raw_layers)
    max_diff = float(jnp.max(jnp.abs(out - ref)))
    assert max_diff < 0.25, f"mismatch vs f32 reference: {max_diff}"  # bf16/approx-recip tol
    print("KERNEL_OK")
</pallas_src>

<mosaic_0001>
module attributes {stable_mosaic.version = 11 : i64} {
  func.func @_proj_kernel(%arg0: i32, %arg1: memref<16x8xf32, #tpu.memory_space<vmem>>, %arg2: memref<8x36xf32, #tpu.memory_space<vmem>>, %arg3: memref<16x32xbf16, #tpu.memory_space<vmem>>, %arg4: memref<16x4xf32, #tpu.memory_space<vmem>>) attributes {dimension_semantics = [#tpu.dimension_semantics<parallel>], iteration_bounds = array<i64: 1>, scalar_prefetch = 0 : i64, scratch_operands = 0 : i64, tpu.core_type = #tpu.core_type<tc>, window_params = [{transform_indices = @transform_0, window_bounds = array<i64: 16, 8>}, {pipeline_mode = #tpu.pipeline_mode<synchronous>, transform_indices = @transform_1, window_bounds = array<i64: 8, 36>}, {transform_indices = @transform_2, window_bounds = array<i64: 16, 32>}, {transform_indices = @transform_3, window_bounds = array<i64: 16, 4>}]} {
    %c0 = arith.constant 0 : index
    %c0_0 = arith.constant 0 : index
    %0 = vector.load %arg1[%c0, %c0_0] : memref<16x8xf32, #tpu.memory_space<vmem>>, vector<16x8xf32>
    %1 = arith.truncf %0 : vector<16x8xf32> to vector<16x8xbf16>
    %c0_1 = arith.constant 0 : index
    %c0_2 = arith.constant 0 : index
    %2 = vector.load %arg2[%c0_1, %c0_2] : memref<8x36xf32, #tpu.memory_space<vmem>>, vector<8x36xf32>
    %3 = arith.truncf %2 : vector<8x36xf32> to vector<8x36xbf16>
    %cst = arith.constant dense<0.000000e+00> : vector<16x36xf32>
    %4 = tpu.matmul %1, %3, %cst {dimension_numbers = #tpu.dot_dimension_numbers<[1], [0], [0], [1], [0, 0, 1, 1], [], []>} : vector<16x8xbf16>, vector<8x36xbf16>, vector<16x36xf32> -> vector<16x36xf32>
    %5 = vector.extract_strided_slice %4 {offsets = [0, 0], sizes = [16, 32], strides = [1, 1]} : vector<16x36xf32> to vector<16x32xf32>
    %6 = arith.truncf %5 : vector<16x32xf32> to vector<16x32xbf16>
    %c0_3 = arith.constant 0 : index
    %c0_4 = arith.constant 0 : index
    %7 = vector.load %arg3[%c0_3, %c0_4] : memref<16x32xbf16, #tpu.memory_space<vmem>>, vector<16x32xbf16>
    tpu.vector_store %arg3[%c0_3, %c0_4], %6 {strides = array<i32>} : memref<16x32xbf16, #tpu.memory_space<vmem>>, vector<16x32xbf16>,
    %8 = vector.extract_strided_slice %4 {offsets = [0, 32], sizes = [16, 4], strides = [1, 1]} : vector<16x36xf32> to vector<16x4xf32>
    %c0_5 = arith.constant 0 : index
    %c0_6 = arith.constant 0 : index
    %9 = vector.load %arg4[%c0_5, %c0_6] : memref<16x4xf32, #tpu.memory_space<vmem>>, vector<16x4xf32>
    tpu.vector_store %arg4[%c0_5, %c0_6], %8 {strides = array<i32>} : memref<16x4xf32, #tpu.memory_space<vmem>>, vector<16x4xf32>,
    return
  }
  func.func @transform_0(%arg0: i32) -> (i32, i32) {
    %c0_i32 = arith.constant 0 : i32
    %c0_i32_0 = arith.constant 0 : i32
    return %arg0, %c0_i32 : i32, i32
  }
  func.func @transform_1(%arg0: i32) -> (i32, i32) {
    %c0_i32 = arith.constant 0 : i32
    %c0_i32_0 = arith.constant 0 : i32
    %c0_i32_1 = arith.constant 0 : i32
    return %c0_i32, %c0_i32_0 : i32, i32
  }
  func.func @transform_2(%arg0: i32) -> (i32, i32) {
    %c0_i32 = arith.constant 0 : i32
    %c0_i32_0 = arith.constant 0 : i32
    return %arg0, %c0_i32 : i32, i32
  }
  func.func @transform_3(%arg0: i32) -> (i32, i32) {
    %c0_i32 = arith.constant 0 : i32
    %c0_i32_0 = arith.constant 0 : i32
    return %arg0, %c0_i32 : i32, i32
  }
}

</mosaic_0001>

<bundles_post_ra>
// kernel: tpu_custom_call.1
= control target key start
LH: loop header
LB: loop body
LE: loop exit
PB: predicated region body
PF: predicated region fallthrough
CT: control target
= control target key end

     0   :  { %vm24_vm0 = vcmask 1043456   ;;  %v154_v3 = vmov 0.0   ;;  %vm155_vm1 = vmmov 0   ;;  %s207_s0 = inlined_call_operand.vmem [shape: f32[16,8], index: 0, kind: input, shape index: {}]   ;;  %s208_s1 = inlined_call_operand.vmem [shape: f32[8,36], index: 1, kind: input, shape index: {}]   ;;  %s209_s2 = inlined_call_operand.hbm [shape: bf16[16,32], index: 2, kind: output, shape index: {0}]   ;;  %s210_s3 = inlined_call_operand.vmem [shape: f32[16,4], index: 3, kind: output, shape index: {1}]  }
   0x1   :  { %v18_v0 = vld [vmem:[%s208_s1] sm:$0xff]  ;;  %v16_v2 = vld [vmem:[%s207_s0 + $0x8] sm:$0xff]  ;;  %118 = vmatprep.subr.bf16.mxu0 %v154_v3  ;;  %120 = vmatprep.mubr.msk.bf16.mxu0 %vm155_vm1, %v154_v3 }
   0x2   :  { %v15_v1 = vld [vmem:[%s207_s0] sm:$0xff]  ;;  %v19_v4 = vpack.c.bf16 %v18_v0, %v18_v0 }
   0x3   :  { %9 = vsyncpa [#allocation3], 0  ;;  %v17_v6 = vpack.c.bf16 %v16_v2, %v15_v1  ;;  %vm20_vm2 = vcmask 64512   ;;  %s156_s1 = smov [#allocation2]   ;;  %vm77_vm3 = vcmask 257024   ;;  %s157_s19 = smov 96  }
   0x4   :  { %v26_v5 = vsel %vm24_vm0, %v19_v4, 0  ;;  %s96_s18 = sshll.u32 %s156_s1, 4  ;;  %s97_s18 = int_to_ptr.vmem [resolvable:$true] %s96_s18 }
   0x5   :  { %119 = vmatpush3.bf16.msra.mxu0 %v26_v5  ;;  %s130_s0 = scalar_lea.vmem %s97_s18, 128  ;;  %p135_p1 = scmp.lt.s32.totalorder %s97_s18, %s97_s18 }
   0x6   :  { %p131_p0 = scmp.ne.s32.totalorder %s97_s18, %s130_s0  ;;  %p136_p2 = scmp.lt.s32.totalorder %s130_s0, %s130_s0 }
   0x8   :  { %121 = vmatmul.mubr.msk.bf16.vlgmr.msra.gmra.mrb[0].mxu0 %vm20_vm2, %v17_v6  ;;  %p137_p3 = por %p136_p2, %p135_p1 }
   0xa   :  { %p138_p4 = pnand %p137_p3, %p131_p0 }
  0xdb   :  { %v62_v7 = vpop.f32.mrb[0].mxu0 }
  0xdc   :  { %v114_v8 = vpack.c.bf16 %v62_v7, %v62_v7  ;;  %82 = vrot.lane.b32.xlu0 %v62_v7, %s157_s19  ;;  %v122_v9 = vpop.f32.mrb[1].mxu0 }
  0xdd   :  { %v65_v10 = vpop.f32.mrb[2].mxu0 }
  0xde   :  { %78 = vst.msk [vmem:[#allocation2] sm:$0xf] %vm77_vm3, %v114_v8  ;;  %v115_v11 = vpack.c.bf16 %v65_v10, %v65_v10  ;;  %v123_v12 = vpop.f32.mrb[3].mxu0 }
  0xe0   :  { %79 = vst.msk [vmem:[#allocation2 + $0x4] sm:$0xf] %vm77_vm3, %v115_v11  ;;  %84 = vrot.lane.b32.xlu0 %v65_v10, %s157_s19 }
  0xe1   :  { %141 = shalt.err (!%p138_p4)
}
  0xe2   :  { %s142_s22 = scalar_lea.hbm %s209_s2, 128 }
  0xe3   :  { %p143_p5 = scmp.ne.s32.totalorder %s209_s2, %s142_s22  ;;  %p146_p6 = scmp.lt.u32.totalorder %s142_s22, %s209_s2 }
  0xe5   :  { %p148_p7 = pnand %p146_p6, %p143_p5 }
  0xe7   :  { %151 = shalt.err (!%p148_p7)
}
  0xe8   :  { %s158_s27 = smov 64   ;;  %s159_s28 = smov 4   ;;  %vm88_vm4 = vcmask 31744  }
  0xe9   :  { %102 = dma.vmem_to_hbm [thread:$0]  %s97_s18, 128, %s209_s2, [#allocation3], %s158_s27, %s158_s27, %s159_s28  }
 0x14e   :  { %v83_v13 = vpop.permute.xlu0 %82 }
 0x14f   :  { %89 = vst.msk [vmem:[%s210_s3] sm:$0xff] %vm88_vm4, %v83_v13 }
 0x152   :  { %v85_v14 = vpop.permute.xlu0 %84 }
 0x153   :  { %90 = vst.msk [vmem:[%s210_s3 + $0x8] sm:$0xff] %vm88_vm4, %v85_v14 }
 0x154   :  { %152 = dma.done.wait [#allocation3], 128  }
 0x155   :  { %153 = vsyncadd [#allocation3], 4294967168 }
 0x156   :  { %110 = vsyncpa [#allocation3], 1 }

</bundles_post_ra>
